<compile_context>
chip_gen: v7x
topology: tpu7x:2x2x1
jax: 0.10.0
libtpu: 0.0.40
codegen_flags: <defaults>
</compile_context>

<pallas_src>
import numpy as np
import jax
import jax.numpy as jnp
from jax.experimental import pallas as pl
from jax.experimental.pallas import tpu as pltpu


# ----------------------------------------------------------------------------
# Host-side: per-axis bilinear interpolation matrices (PyTorch align_corners=False)
# ----------------------------------------------------------------------------
def _bilinear_matrix(n_in, scale):
    """P of shape (n_in, n_out) with out[j] = sum_i P[i, j] * in[i], matching
    F.interpolate(mode='bilinear', align_corners=False) along one axis."""
    n_out = int(np.floor(n_in * scale))
    P = np.zeros((n_in, n_out), np.float32)
    for j in range(n_out):
        src = (j + 0.5) / scale - 0.5
        src = max(src, 0.0)
        i0 = min(int(np.floor(src)), n_in - 1)
        i1 = min(i0 + 1, n_in - 1)
        w = np.float32(src - i0)
        P[i0, j] += np.float32(1.0) - w
        P[i1, j] += w
    return P


def _composed_interp_matrix(n_in, n_stages, scale):
    """Compose n_stages of per-axis bilinear resizing into a single (n_in, n_final) matrix."""
    P = np.eye(n_in, dtype=np.float32)
    n = n_in
    for _ in range(n_stages):
        Ps = _bilinear_matrix(n, scale)
        P = P @ Ps
        n = Ps.shape[1]
    return P


# ----------------------------------------------------------------------------
# Pallas kernel
# ----------------------------------------------------------------------------
def _make_rescaler_kernel(C_in, C_out, remap, has_bias):
    def kernel(*refs):
        if remap and has_bias:
            x_ref, pht_ref, pw_ref, w_ref, b_ref, o_ref = refs
        elif remap:
            x_ref, pht_ref, pw_ref, w_ref, o_ref = refs
        else:
            x_ref, pht_ref, pw_ref, o_ref = refs

        v = x_ref[0].astype(jnp.float32)          # (C, H, W)
        Hh, H = pht_ref.shape                     # (H_out, H)
        W, Ww = pw_ref.shape                      # (W, W_out)

        # Interpolate along W:  (C, H, W) @ (W, W_out) -> (C, H, W_out)   [batched over C, MXU]
        pw_b = jnp.broadcast_to(pw_ref[...][None], (C_in, W, Ww))
        y = jax.lax.dot_general(v, pw_b,
                                dimension_numbers=(((2,), (1,)), ((0,), (0,))),
                                preferred_element_type=jnp.float32)

        # Interpolate along H:  (H_out, H) @ (C, H, W_out) -> (C, H_out, W_out)  [batched, MXU]
        ph_b = jnp.broadcast_to(pht_ref[...][None], (C_in, Hh, H))
        y = jax.lax.dot_general(ph_b, y,
                                dimension_numbers=(((2,), (1,)), ((0,), (0,))),
                                preferred_element_type=jnp.float32)

        if remap:
            # 1x1 conv channel mapper: z[o] = sum_c W[o, c] * y[c] (+ bias[o]).
            # Channel counts are tiny -> unrolled scalar * tile VPU multiply-adds (SMEM scalars).
            for o in range(C_out):
                acc = jnp.zeros((Hh, Ww), jnp.float32)
                for c in range(C_in):
                    acc = acc + w_ref[o, c] * y[c]
                if has_bias:
                    acc = acc + b_ref[o]
                o_ref[0, o] = acc.astype(o_ref.dtype)
        else:
            o_ref[0] = y.astype(o_ref.dtype)

    return kernel


# ----------------------------------------------------------------------------
# Wrapper: SpatialRescaler.forward
# ----------------------------------------------------------------------------
def spatial_rescaler_forward(x, *, n_stages=1, method='bilinear', multiplier=0.5,
                             channel_map_weight=None, channel_map_bias=None):
    """Pallas implementation of SpatialRescaler.forward.

    x:                  (B, C, H, W) float32, NCHW (PyTorch layout).
    channel_map_weight: optional (C_out, C_in) 1x1-conv weight (remap_output path).
    channel_map_bias:   optional (C_out,) bias.
    """
    assert n_stages >= 0
    if method not in ('bilinear',):
        # TODO(synk): nearest / bicubic / area / (tri)linear interpolation modes not implemented.
        raise NotImplementedError(f"method={method!r} not supported; only 'bilinear'")

    B, C, H, W = x.shape

    # Compose all stages into one interpolation matrix per spatial axis (host-side, static).
    P_h = _composed_interp_matrix(H, n_stages, multiplier)     # (H, H_out)
    P_w = _composed_interp_matrix(W, n_stages, multiplier)     # (W, W_out)
    H_out, W_out = P_h.shape[1], P_w.shape[1]
    pht = jnp.asarray(P_h.T)                                   # (H_out, H)
    pw = jnp.asarray(P_w)                                      # (W, W_out)

    remap = channel_map_weight is not None
    has_bias = channel_map_bias is not None
    if has_bias and not remap:
        raise ValueError("channel_map_bias given without channel_map_weight")
    C_out = int(channel_map_weight.shape[0]) if remap else C

    in_specs = [
        # One (C, H, W) slab per grid step; last two dims equal the full array dims.
        pl.BlockSpec((1, C, H, W), lambda b: (b, 0, 0, 0)),
        pl.BlockSpec((H_out, H), lambda b: (0, 0)),
        pl.BlockSpec((W, W_out), lambda b: (0, 0)),
    ]
    args = [x, pht, pw]
    if remap:
        in_specs.append(pl.BlockSpec(memory_space=pltpu.MemorySpace.SMEM))
        args.append(jnp.asarray(channel_map_weight, jnp.float32))
        if has_bias:
            in_specs.append(pl.BlockSpec(memory_space=pltpu.MemorySpace.SMEM))
            args.append(jnp.asarray(channel_map_bias, jnp.float32))

    out = pl.pallas_call(
        _make_rescaler_kernel(C, C_out, remap, has_bias),
        grid=(B,),
        in_specs=in_specs,
        out_specs=pl.BlockSpec((1, C_out, H_out, W_out), lambda b: (b, 0, 0, 0)),
        out_shape=jax.ShapeDtypeStruct((B, C_out, H_out, W_out), x.dtype),
        compiler_params=pltpu.CompilerParams(dimension_semantics=("parallel",)),
    )(*args)
    return out


# ----------------------------------------------------------------------------
# Self-test
# ----------------------------------------------------------------------------
if __name__ == "__main__":
    rng = jax.random.PRNGKey(0)
    k_x, k_w, k_b = jax.random.split(rng, 3)

    B, C, H, W = 2, 3, 16, 16
    x = jax.random.normal(k_x, (B, C, H, W), dtype=jnp.float32)

    # --- Config 1: module defaults (n_stages=1, bilinear, multiplier=0.5, no remap) ---
    y = spatial_rescaler_forward(x, n_stages=1, method='bilinear', multiplier=0.5)
    jax.block_until_ready(y)
    # At scale 0.5, PyTorch bilinear (align_corners=False) == exact 2x2 average pooling.
    ref = x.reshape(B, C, H // 2, 2, W // 2, 2).mean(axis=(3, 5))
    assert y.shape == (B, C, H // 2, W // 2), y.shape
    assert y.dtype == jnp.float32
    assert jnp.allclose(y, ref, atol=1e-5, rtol=1e-5)

    # --- Config 2: n_stages=2 + 1x1 conv channel mapper (3 -> 4 channels) with bias ---
    C_out = 4
    wmap = jax.random.normal(k_w, (C_out, C), dtype=jnp.float32) * 0.1
    bmap = jax.random.normal(k_b, (C_out,), dtype=jnp.float32) * 0.1
    y2 = spatial_rescaler_forward(x, n_stages=2, method='bilinear', multiplier=0.5,
                                  channel_map_weight=wmap, channel_map_bias=bmap)
    jax.block_until_ready(y2)
    pooled = x.reshape(B, C, H // 4, 4, W // 4, 4).mean(axis=(3, 5))
    ref2 = jnp.einsum('oc,bchw->bohw', wmap, pooled) + bmap[None, :, None, None]
    assert y2.shape == (B, C_out, H // 4, W // 4), y2.shape
    assert jnp.allclose(y2, ref2, atol=1e-5, rtol=1e-5)

    print("KERNEL_OK")
</pallas_src>

<mosaic_0001>
module attributes {stable_mosaic.version = 11 : i64} {
  func.func @kernel(%arg0: i32, %arg1: memref<1x3x16x16xf32, #tpu.memory_space<vmem>>, %arg2: memref<8x16xf32, #tpu.memory_space<vmem>>, %arg3: memref<16x8xf32, #tpu.memory_space<vmem>>, %arg4: memref<1x3x8x8xf32, #tpu.memory_space<vmem>>) attributes {dimension_semantics = [#tpu.dimension_semantics<parallel>], iteration_bounds = array<i64: 2>, scalar_prefetch = 0 : i64, scratch_operands = 0 : i64, tpu.core_type = #tpu.core_type<tc>, window_params = [{transform_indices = @transform_0, window_bounds = array<i64: 1, 3, 16, 16>}, {pipeline_mode = #tpu.pipeline_mode<synchronous>, transform_indices = @transform_1, window_bounds = array<i64: 8, 16>}, {pipeline_mode = #tpu.pipeline_mode<synchronous>, transform_indices = @transform_2, window_bounds = array<i64: 16, 8>}, {transform_indices = @transform_3, window_bounds = array<i64: 1, 3, 8, 8>}]} {
    %c0 = arith.constant 0 : index
    %c0_0 = arith.constant 0 : index
    %c0_1 = arith.constant 0 : index
    %c0_2 = arith.constant 0 : index
    %0 = vector.load %arg1[%c0, %c0_0, %c0_1, %c0_2] : memref<1x3x16x16xf32, #tpu.memory_space<vmem>>, vector<1x3x16x16xf32>
    %1 = vector.shape_cast %0 : vector<1x3x16x16xf32> to vector<3x16x16xf32>
    %c0_3 = arith.constant 0 : index
    %c0_4 = arith.constant 0 : index
    %2 = vector.load %arg3[%c0_3, %c0_4] : memref<16x8xf32, #tpu.memory_space<vmem>>, vector<16x8xf32>
    %3 = vector.shape_cast %2 : vector<16x8xf32> to vector<1x16x8xf32>
    %4 = vector.shape_cast %3 : vector<1x16x8xf32> to vector<1x16x8xf32>
    %5 = vector.broadcast %4 : vector<1x16x8xf32> to vector<3x16x8xf32>
    %cst = arith.constant dense<0.000000e+00> : vector<3x16x8xf32>
    %6 = tpu.matmul %1, %5, %cst {dimension_numbers = #tpu.dot_dimension_numbers<[2], [1], [1], [2], [0, 0, 0, 1, 1, 2], [0], [0]>} : vector<3x16x16xf32>, vector<3x16x8xf32>, vector<3x16x8xf32> -> vector<3x16x8xf32>
    %c0_5 = arith.constant 0 : index
    %c0_6 = arith.constant 0 : index
    %7 = vector.load %arg2[%c0_5, %c0_6] : memref<8x16xf32, #tpu.memory_space<vmem>>, vector<8x16xf32>
    %8 = vector.shape_cast %7 : vector<8x16xf32> to vector<1x8x16xf32>
    %9 = vector.shape_cast %8 : vector<1x8x16xf32> to vector<1x8x16xf32>
    %10 = vector.broadcast %9 : vector<1x8x16xf32> to vector<3x8x16xf32>
    %cst_7 = arith.constant dense<0.000000e+00> : vector<3x8x8xf32>
    %11 = tpu.matmul %10, %6, %cst_7 {dimension_numbers = #tpu.dot_dimension_numbers<[2], [1], [1], [2], [0, 0, 0, 1, 1, 2], [0], [0]>} : vector<3x8x16xf32>, vector<3x16x8xf32>, vector<3x8x8xf32> -> vector<3x8x8xf32>
    %c0_8 = arith.constant 0 : index
    %c0_9 = arith.constant 0 : index
    %c0_10 = arith.constant 0 : index
    %c0_11 = arith.constant 0 : index
    %12 = vector.load %arg4[%c0_8, %c0_9, %c0_10, %c0_11] : memref<1x3x8x8xf32, #tpu.memory_space<vmem>>, vector<1x3x8x8xf32>
    %13 = vector.shape_cast %12 : vector<1x3x8x8xf32> to vector<3x8x8xf32>
    %14 = vector.shape_cast %11 : vector<3x8x8xf32> to vector<1x3x8x8xf32>
    tpu.vector_store %arg4[%c0_8, %c0_9, %c0_10, %c0_11], %14 {strides = array<i32>} : memref<1x3x8x8xf32, #tpu.memory_space<vmem>>, vector<1x3x8x8xf32>,
    return
  }
  func.func @transform_0(%arg0: i32) -> (i32, i32, i32, i32) {
    %c0_i32 = arith.constant 0 : i32
    %c0_i32_0 = arith.constant 0 : i32
    %c0_i32_1 = arith.constant 0 : i32
    %c0_i32_2 = arith.constant 0 : i32
    return %arg0, %c0_i32, %c0_i32_0, %c0_i32_1 : i32, i32, i32, i32
  }
  func.func @transform_1(%arg0: i32) -> (i32, i32) {
    %c0_i32 = arith.constant 0 : i32
    %c0_i32_0 = arith.constant 0 : i32
    %c0_i32_1 = arith.constant 0 : i32
    return %c0_i32, %c0_i32_0 : i32, i32
  }
  func.func @transform_2(%arg0: i32) -> (i32, i32) {
    %c0_i32 = arith.constant 0 : i32
    %c0_i32_0 = arith.constant 0 : i32
    %c0_i32_1 = arith.constant 0 : i32
    return %c0_i32, %c0_i32_0 : i32, i32
  }
  func.func @transform_3(%arg0: i32) -> (i32, i32, i32, i32) {
    %c0_i32 = arith.constant 0 : i32
    %c0_i32_0 = arith.constant 0 : i32
    %c0_i32_1 = arith.constant 0 : i32
    %c0_i32_2 = arith.constant 0 : i32
    return %arg0, %c0_i32, %c0_i32_0, %c0_i32_1 : i32, i32, i32, i32
  }
}

</mosaic_0001>

<bundles_post_ra>
// kernel: tpu_custom_call.1
= control target key start
LH: loop header
LB: loop body
LE: loop exit
PB: predicated region body
PF: predicated region fallthrough
CT: control target
= control target key end

     0   :  { %8 = vsyncpa [#allocation3], 0  ;;  %s1210_s0 = inlined_call_operand.hbm [shape: f32[2,3,16,16], index: 0, kind: input, shape index: {}]   ;;  %s1211_s1 = inlined_call_operand.vmem [shape: f32[8,16], index: 1, kind: input, shape index: {}]   ;;  %s1212_s2 = inlined_call_operand.vmem [shape: f32[16,8], index: 2, kind: input, shape index: {}]   ;;  %s1213_s3 = inlined_call_operand.hbm [shape: f32[2,3,8,8], index: 3, kind: output, shape index: {}]  }
   0x1   :  { %10 = vsyncpa [#allocation3 + $0x1], 0 }
   0x2   :  { %11 = vsyncpa [#allocation4], 0 }
   0x3   :  { %13 = vsyncpa [#allocation4 + $0x1], 0  ;;  %s1032_s12 = smov 0   ;;  %s1034_s13 = smov 0  }
   0x4   :  { %s1036_s14 = smov 0   ;;  %s1038_s15 = smov 0  }
   0x5 LB: > { %s1053_s16 = sadd.s32 4294967295, %s1001_s15   ;;  %s746_s17 = sadd.s32 4294967294, %s1001_s15   ;;  %s1001_s15 = sphi %s1038_s15, %s1225_s15   ;;  %s997_s14 = sphi %s1036_s14, %s1224_s14   ;;  %s993_s13 = sphi %s1034_s13, %s1223_s13   ;;  %s989_s12 = sphi %s1032_s12, %s1222_s12  }
   0x6   : > { %s1057_s18 = sadd.s32 1, %s1001_s15   ;;  %s26_s19 = sadd.s32 1, %s997_s14 }
   0x7   : > { %s23_s20 = ssub.s32 %s1001_s15, %s1057_s18  ;;  %p33_p0 = scmp.ne.s32.totalorder %s997_s14, %s993_s13 }
   0x8   : > { %p24_p1 = scmp.eq.s32.totalorder %s23_s20, 0  ;;  %p34_p2 = scmp.eq.s32.totalorder %s1001_s15, 0 }
   0x9   : > { %p39_p3 = scmp.ne.s32.totalorder %s993_s13, %s989_s12  ;;  %p40_p4 = scmp.eq.s32.totalorder %s1053_s16, 0 }
   0xa   : > { %s1069_s21 = scalar_select %p24_p1, %s997_s14, %s26_s19  }
   0xb   : > { %p35_p5 = por %p34_p2, %p33_p0  ;;  %p1071_p6 = por %p40_p4, %p39_p3 }
   0xc   : > { %p105_p7 = scmp.eq.s32.totalorder %s1053_s16, 1  ;;  %p111_p8 = scmp.eq.s32.totalorder %s746_s17, 1 }
   0xd   : > { %p864_p10 = scmp.lt.s32.totalorder %s1001_s15, 2  ;;  %s137_s25 = sand.u32 1, %s997_s14  }
   0xe   : > { %p1078_p11 = por %p105_p7, %p33_p0  ;;  %p1082_p12 = por %p111_p8, %p39_p3 }
   0xf   : > { %s848_s26 = smul.u32 768, %s1001_s15  ;;  %p1093_p13 = pnand %p864_p10, %p35_p5 }
  0x10   : > { %s1216_s23 = scalar_select %p1078_p11, 1, 0 }
  0x11   : > { %s1217_s24 = scalar_select %p1082_p12, 1, 0 }
  0x12   : > { %s847_s27 = smul.u32 48, %s137_s25  ;;  %s1091_s30 = scalar_lea.hbm %s1210_s0, %s848_s26 }
  0x13   : > { %s1099_s7 = scalar_lea.sflag [#allocation3], %s137_s25  ;;  %s905_s8 = scalar_lea.hbm %s1091_s30, 768 }
  0x14   : > { %s141_s5 = scalar_lea.vmem [#allocation2], %s847_s27  ;;  %p906_p0 = scmp.ne.s32.totalorder %s1091_s30, %s905_s8 }
  0x15   : > { %s148_s6 = sshll.u32 %s141_s5, 4  ;;  %p907_p1 = pneg %p1093_p13  ;;  %s1097_s6 = int_to_ptr.vmem [resolvable:$true] %s148_s6 }
  0x16   : > { %s910_s11 = scalar_lea.hbm %s1210_s0, 1536  ;;  %p911_p4 = scmp.lt.u32.totalorder %s1091_s30, %s1210_s0 }
  0x17   : > { %p908_p2 = pnand %p907_p1, %p906_p0  ;;  %p912_p5 = scmp.lt.u32.totalorder %s910_s11, %s905_s8 }
  0x18   : > { %p914_p8 = scmp.lt.u32.totalorder %s905_s8, %s1091_s30 }
  0x19   : > { %p909_p3 = pneg %p908_p2  ;;  %p913_p7 = por %p912_p5, %p911_p4 }
  0x1b   : > { %p915_p10 = por %p914_p8, %p913_p7 }
  0x1d   : > { %p916_p9 = pnand %p915_p10, %p909_p3 }
  0x1f   : > { %919 = shalt.err (!%p916_p9)
}
  0x20   : > { %s920_s20 = scalar_lea.vmem %s1097_s6, 768  ;;  %s1003_s25 = smov [#allocation2]  }
  0x21   : > { %p921_p0 = scmp.ne.s32.totalorder %s1097_s6, %s920_s20  ;;  %s925_s26 = sshll.u32 %s1003_s25, 4  ;;  %s926_s26 = int_to_ptr.vmem [resolvable:$false] %s925_s26 }
  0x22   : > { %s927_s27 = scalar_lea.vmem %s926_s26, 1536  ;;  %p928_p11 = scmp.lt.s32.totalorder %s1097_s6, %s926_s26 }
  0x23   : > { %p923_p2 = pnand %p921_p0, %p907_p1  ;;  %p929_p4 = scmp.lt.s32.totalorder %s927_s27, %s920_s20 }
  0x25   : > { %p924_p12 = pneg %p923_p2  ;;  %p930_p5 = por %p929_p4, %p928_p11 }
  0x27   : > { %p931_p7 = pnand %p930_p5, %p924_p12 }
  0x29   : > { %934 = shalt.err (!%p931_p7)
}
  0x2a   : > { %s1004_s28 = smov 128   ;;  %s1005_s29 = smov 8  }
  0x2b   : > { %859 = dma.hbm_to_vmem [thread:$0]  (!%p1093_p13), %s1091_s30, 768, %s1097_s6, %s1099_s7, %s1004_s28, %s1004_s28, %s1005_s29  }
  0x2c   : > { %p750_p9 = scmp.ge.s32.totalorder %s1001_s15, 1  ;;  %p156_p1 = scmp.lt.s32.totalorder %s1001_s15, 3 }
  0x2e   : > { %p157_p3 = pnand %p750_p9, %p156_p1 }
  0x2f   : > { %s1130_s5 = sand.u32 (!%p157_p3), 1, %s993_s13  }
  0x30   : > { %160 = sbr.rel (%p157_p3) target bundleno = 512 (0x200), region = 32  ;;  %s163_s9 = scalar_lea.sflag (!%p157_p3), [#allocation3], %s1130_s5 }
  0x31   : > { %s849_s8 = smul.u32 (!%p157_p3), 48, %s1130_s5 }
  0x33   : > { %s166_s10 = scalar_lea.vmem (!%p157_p3), [#allocation2], %s849_s8 }
  0x37   : > { %980 = dma.done.wait (%p1071_p6), %s163_s9, 768  }
  0x38   : > { %982 = vsyncadd (%p1071_p6), %s163_s9, 4294966528  ;;  %vm197_vm0 = vcmask 130048   ;;  %v195_v0 = vld [vmem:[%s1212_s2] sm:$0xff]  ;;  %v196_v1 = vld [vmem:[%s1212_s2 + $0x8] sm:$0xff]  ;;  %v1006_v9 = vmov 0.0|0.0   ;;  %vm1007_vm1 = vmmov 0  }
  0x39   : > { %v189_v2 = vld [vmem:[%s166_s10] sm:$0xff]  ;;  %v826_v3 = vpack.c.bf16 %v196_v1, %v195_v0  ;;  %v191_v4 = vld [vmem:[%s166_s10 + $0x10] sm:$0xff]  ;;  %v190_v5 = vld [vmem:[%s166_s10 + $0x8] sm:$0xff]  ;;  %v1008_v10 = vmov 0.0   ;;  %s850_s17 = smul.u32 24, %s1130_s5  ;;  %vm655_vm2 = vcmask 64512  }
  0x3a   : > { %788 = vmatprep.mubr.msk.f32.mxu0 %vm197_vm0, %v189_v2  ;;  %795 = vmatprep.mubr.msk.f32.mxu1 %vm197_vm0, %v191_v4  ;;  %v192_v6 = vld [vmem:[%s166_s10 + $0x18] sm:$0xff]  ;;  %v193_v7 = vld [vmem:[%s166_s10 + $0x20] sm:$0xff]  ;;  %v194_v8 = vld [vmem:[%s166_s10 + $0x28] sm:$0xff]  ;;  %s851_s25 = smul.u32 384, %s1053_s16  ;;  %s660_s16 = scalar_lea.sflag [#allocation4], %s1130_s5 }
  0x3b   : > { %827 = vmatprep.subr.bf16.mxu0 %v826_v3  ;;  %831 = vmatprep.subr.bf16.mxu1 %v826_v3  ;;  %v441_v18 = vld [vmem:[%s1211_s1] sm:$0xff]  ;;  %s188_s19 = scalar_lea.vmem [#allocation5], %s850_s17  ;;  %p1219_p11 = scmp.ne.s32.totalorder %s1216_s23, 0 }
  0x3c   : > { %829 = vmatpush3.bf16.msra.mxu0 %v826_v3  ;;  %833 = vmatpush3.bf16.msra.mxu1 %v826_v3  ;;  %s673_s20 = sshll.u32 %s188_s19, 4  ;;  %s1166_s28 = scalar_lea.hbm %s1213_s3, %s851_s25  ;;  %s1161_s20 = int_to_ptr.vmem [resolvable:$true] %s673_s20 }
  0x3d   : > { %835 = vmatprep.subr.bf16.mxu0 %v826_v3  ;;  %838 = vmatprep.subr.bf16.mxu1 %v1006_v9  ;;  %s935_s29 = scalar_lea.vmem %s1161_s20, 384  ;;  %s1009_s8 = smov [#allocation5]  }
  0x3e   : > { %p936_p6 = scmp.ne.s32.totalorder %s1161_s20, %s935_s29  ;;  %s939_s9 = sshll.u32 %s1009_s8, 4  ;;  %s940_s9 = int_to_ptr.vmem [resolvable:$false] %s939_s9 }
  0x3f   : > { %789 = vmatmul.mubr.msk.f32.vlgmr.msra.gmra.mrb[0].mxu0 %vm197_vm0, %v190_v5  ;;  %796 = vmatmul.mubr.msk.f32.vlgmr.msra.gmra.mrb[0].mxu1 %vm197_vm0, %v192_v6  ;;  %s941_s10 = scalar_lea.vmem %s940_s9, 768  ;;  %p942_p8 = scmp.lt.s32.totalorder %s1161_s20, %s940_s9 }
  0x40   : > { %837 = vmatpush3.bf16.msra.mxu0 %v826_v3  ;;  %802 = vmatprep.mubr.msk.f32.mxu0 %vm197_vm0, %v193_v7  ;;  %p937_p12 = pnand %p936_p6, %p1219_p11  ;;  %p943_p10 = scmp.lt.s32.totalorder %s941_s10, %s935_s29 }
  0x41   : > { %841 = vmatprep.subr.bf16.mxu0 %v1006_v9  ;;  %809 = vmatprep.mubr.msk.f32.mxu1 %vm1007_vm1, %v1008_v10 }
  0x42   : > { %p938_p13 = pneg %p937_p12  ;;  %p944_p0 = por %p943_p10, %p942_p8 }
  0x43   : > { %803 = vmatmul.mubr.msk.f32.vlgmr.msra.gmra.mrb[2].mxu0 %vm197_vm0, %v194_v8 }
  0x44   : > { %816 = vmatprep.mubr.msk.f32.mxu0 %vm1007_vm1, %v1008_v10  ;;  %p945_p2 = pnand %p944_p0, %p938_p13 }
 0x112   : > { %v790_v11 = vpop.f32.mrb[0].mxu0  ;;  %v797_v12 = vpop.f32.mrb[0].mxu1 }
 0x113   : > { %v270_v13 = vpop.f32.mrb[1].mxu0  ;;  %v351_v14 = vpop.f32.mrb[1].mxu1 }
 0x114   : > { %v839_v15 = vpack.c.bf16 %v790_v11, %v270_v13  ;;  %v842_v16 = vpack.c.bf16 %v797_v12, %v351_v14 }
 0x116   : > { %v804_v17 = vpop.f32.mrb[2].mxu0  ;;  %840 = vmatpush3.bf16.msra.mxu1 %v839_v15  ;;  %843 = vmatpush3.bf16.msra.mxu0 %v842_v16 }
 0x117   : > { %v432_v19 = vpop.f32.mrb[3].mxu0  ;;  %844 = vmatprep.subr.bf16.mxu1 %v1006_v9 }
 0x118   : > { %v845_v20 = vpack.c.bf16 %v804_v17, %v432_v19 }
 0x119   : > { %810 = vmatmul.mubr.msk.f32.vlgmr.msra.gmra.mrb[2].mxu1 %vm197_vm0, %v441_v18  ;;  %817 = vmatmul.mubr.msk.f32.vlgmr.msra.gmra.mrb[4].mxu0 %vm197_vm0, %v441_v18 }
 0x11a   : > { %846 = vmatpush3.bf16.msra.mxu1 %v845_v20  ;;  %823 = vmatprep.mubr.msk.f32.mxu1 %vm1007_vm1, %v1008_v10 }
 0x11d   : > { %824 = vmatmul.mubr.msk.f32.vlgmr.msra.gmra.mrb[4].mxu1 %vm197_vm0, %v441_v18 }
 0x1ec   : > { %v511_v21 = vpop.f32.mrb[2].mxu1  ;;  %v581_v22 = vpop.f32.mrb[4].mxu0 }
 0x1ed   : > { %656 = vst.msk [vmem:[%s188_s19] sm:$0xff] %vm655_vm2, %v511_v21  ;;  %v811_v23 = vpop.f32.mrb[3].mxu1  ;;  %657 = vst.msk [vmem:[%s188_s19 + $0x8] sm:$0xff] %vm655_vm2, %v581_v22  ;;  %v818_v24 = vpop.f32.mrb[5].mxu0 }
 0x1f0   : > { %v651_v25 = vpop.f32.mrb[4].mxu1 }
 0x1f1   : > { %658 = vst.msk [vmem:[%s188_s19 + $0x10] sm:$0xff] %vm655_vm2, %v651_v25  ;;  %v825_v26 = vpop.f32.mrb[5].mxu1 }
 0x1f2   : > { %948 = shalt.err (!%p945_p2)
}
 0x1f3   : > { %s949_s30 = scalar_lea.hbm %s1166_s28, 384  ;;  %s953_s7 = scalar_lea.hbm %s1213_s3, 768 }
 0x1f4   : > { %p950_p4 = scmp.ne.s32.totalorder %s1166_s28, %s949_s30  ;;  %p954_p9 = scmp.lt.u32.totalorder %s1166_s28, %s1213_s3 }
 0x1f5   : > { %p955_p1 = scmp.lt.u32.totalorder %s953_s7, %s949_s30  ;;  %p957_p6 = scmp.lt.u32.totalorder %s949_s30, %s1166_s28 }
 0x1f6   : > { %p951_p5 = pnand %p950_p4, %p1219_p11 }
 0x1f7   : > { %p956_p3 = por %p955_p1, %p954_p9 }
 0x1f8   : > { %p952_p7 = pneg %p951_p5 }
 0x1f9   : > { %p958_p12 = por %p957_p6, %p956_p3 }
 0x1fb   : > { %p959_p13 = pnand %p958_p12, %p952_p7 }
 0x1fd   : > { %962 = shalt.err (!%p959_p13)
}
 0x1fe   : > { %s1010_s17 = smov 128   ;;  %s1011_s19 = smov 8  }
 0x1ff   : > { %854 = dma.vmem_to_hbm [thread:$0]  (%p1219_p11), %s1161_s20, 384, %s1166_s28, %s660_s16, %s1010_s17, %s1010_s17, %s1011_s19  }
 0x200 PF: > { %s688_s25 = sand.u32 1, %s989_s12   ;;  %p1220_p8 = scmp.ne.s32.totalorder %s1217_s24, 0 }
 0x201   : > { %p1221_p10 = scmp.ge.s32.totalorder %s1001_s15, 2  ;;  %s689_s26 = scalar_lea.sflag [#allocation4], %s688_s25 }
 0x203   : > { %p861_p0 = pnand %p1221_p10, %p1220_p8 }
 0x205   : > { %984 = dma.done.wait (!%p861_p0), %s689_s26, 384  }
 0x206   : > { %986 = vsyncadd (!%p861_p0), %s689_s26, 4294966912  ;;  %p16_p2 = scmp.ge.s32.totalorder %s1057_s18, 4   ;;  %s1222_s12 = smov %s993_s13 }
 0x207   : > { %s1223_s13 = smov %s997_s14  ;;  %s1224_s14 = smov %s1069_s21 }
 0x208   : > { %s1225_s15 = smov %s1057_s18  ;;  %18 = sbr.rel (!%p16_p2) target bundleno = 5 (0x5), region = 77 }
 0x20f   :  { %694 = vsyncpa [#allocation3], 1 }
 0x210   :  { %696 = vsyncpa [#allocation3 + $0x1], 1 }
 0x211   :  { %697 = vsyncpa [#allocation4], 1 }
 0x212   :  { %699 = vsyncpa [#allocation4 + $0x1], 1 }

</bundles_post_ra>
